<compile_context>
chip_gen: v7x
topology: tpu7x:2x2x1
jax: 0.10.0
libtpu: 0.0.40
codegen_flags: <defaults>
</compile_context>

<pallas_src>
import functools

import jax
import jax.numpy as jnp
from jax.experimental import pallas as pl
from jax.experimental.pallas import tpu as pltpu


_LANE = 128
_SUBLANE = 8


def _round_up(x, m):
    return ((x + m - 1) // m) * m


# ---------------------------------------------------------------------------
# Kernel
# ---------------------------------------------------------------------------
def _linear_tanh_kernel(x_ref, w_ref, b_ref, o_ref):
    # x_ref: (tm, K); w_ref: (K, tn) lane-dense; b_ref: (1, tn); o_ref: (tm, tn)
    acc = jnp.dot(x_ref[...], w_ref[...],
                  preferred_element_type=jnp.float32)      # MXU
    acc = acc + b_ref[...]                                  # VPU: broadcast (1, tn)
    o_ref[...] = jnp.tanh(acc).astype(o_ref.dtype)          # EUP: tanh epilogue in f32


# ---------------------------------------------------------------------------
# Hardware-aware budgeting / tile selection
# ---------------------------------------------------------------------------
@functools.lru_cache(maxsize=1)
def _vmem_budget_and_two_tc():
    """Scoped-VMEM budget (bytes) and whether the part looks like v7x (2 TCs)."""
    cap = None
    try:
        info = pltpu.get_tpu_info()
        cap = int(getattr(info, "vmem_capacity_bytes", 0)) or None
    except Exception:
        cap = None
    if cap is None:
        cap = 64 << 20                       # v7x-safe fallback (smallest VMEM)
    budget = min(int(cap * 0.70), cap - (8 << 20))   # ~45 MiB on v7x, ~90 MiB on v5e/v6e
    budget = max(budget, 16 << 20)
    budget = min(budget, cap)
    two_tc = cap <= (64 << 20)               # proxy: 64 MiB VMEM/TC => v7x (2 TCs/chip)
    return budget, two_tc


def _select_tiles(M, K, N_pad, x_itemsize, out_itemsize, budget, two_tc):
    headroom = 2 << 20

    # Pallas double-buffers EVERY BlockSpec input by default, even ones with a
    # constant index_map, so the "resident" weight/bias cost 2x their size.
    def resident(tn):
        return 2 * 4 * (K * tn + tn)                       # f32 weight (K,tn) + bias (1,tn)

    def stream_per_row(tn):
        return 2 * (K * x_itemsize + tn * out_itemsize)    # 2x-buffered x tile + out tile

    # N-tiling fallback: shrink tn (multiple of 128) until the resident params
    # plus a minimal streamed tile fit the budget.
    tn = N_pad
    while tn > _LANE and (resident(tn) + _SUBLANE * stream_per_row(tn) + headroom) > budget:
        tn = max(_LANE, ((tn // 2 + _LANE - 1) // _LANE) * _LANE)

    avail = max(budget - resident(tn) - headroom, _SUBLANE * stream_per_row(tn))
    tm = avail // stream_per_row(tn)
    tm = min(tm, 8192)                       # per-row bytes are tiny; large tiles amortize
                                             # the ~0.35us fixed per-grid-step overhead
    tm = min(tm, _round_up(M, _SUBLANE))
    if two_tc and M > _SUBLANE:
        # Only on 2-TC parts: keep >= 2 grid steps along M so the "parallel"
        # axis can shard across both TensorCores.
        tm = min(tm, _round_up((M + 1) // 2, _SUBLANE))
    tm = max(_SUBLANE, (tm // _SUBLANE) * _SUBLANE)
    return int(tm), int(tn)


# ---------------------------------------------------------------------------
# One-time parameter preparation (outside the per-forward jit)
# ---------------------------------------------------------------------------
def prepare_linear_hidden_params(weight, bias, param_dtype=jnp.float32):
    """weight: (N, K) PyTorch nn.Linear layout, bias: (N,).

    Returns lane-dense padded params: w_kn (K, N_pad), b_1n (1, N_pad), with
    N_pad = round_up(N, 128). Padded columns produce tanh(0 + 0) = 0.
    """
    N, K = weight.shape
    assert bias.shape == (N,)
    N_pad = _round_up(N, _LANE)
    w_kn = jnp.pad(jnp.asarray(weight, param_dtype).T, ((0, 0), (0, N_pad - N)))
    b_1n = jnp.pad(jnp.asarray(bias, jnp.float32), (0, N_pad - N)).reshape(1, N_pad)
    return w_kn, b_1n


# ---------------------------------------------------------------------------
# Forward
# ---------------------------------------------------------------------------
@functools.partial(jax.jit, static_argnames=("n_valid", "out_dtype", "keep_padded"))
def linear_hidden_forward(x, w_kn, b_1n, *, n_valid=None, out_dtype=None,
                          keep_padded=False):
    """tanh(x @ W.T + b) with pre-prepared lane-dense params.

    x: (M, K); w_kn: (K, N_pad) padded weight.T; b_1n: (1, N_pad).
    Returns (M, n_valid), or the padded (M, N_pad) when keep_padded=True
    (preferred when chaining layers so the slice-copy happens only once).
    """
    M, K = x.shape
    K2, N_pad = w_kn.shape
    assert K == K2 and b_1n.shape == (1, N_pad) and N_pad % _LANE == 0

    out_dtype = x.dtype if out_dtype is None else jnp.dtype(out_dtype)

    budget, two_tc = _vmem_budget_and_two_tc()
    tm, tn = _select_tiles(M, K, N_pad, x.dtype.itemsize, out_dtype.itemsize,
                           budget, two_tc)
    grid = (pl.cdiv(M, tm), pl.cdiv(N_pad, tn))

    out = pl.pallas_call(
        _linear_tanh_kernel,
        out_shape=jax.ShapeDtypeStruct((M, N_pad), out_dtype),
        grid_spec=pl.GridSpec(
            grid=grid,
            in_specs=[
                pl.BlockSpec((tm, K), lambda i, j: (i, 0)),    # streamed x row tile
                pl.BlockSpec((K, tn), lambda i, j: (0, j)),    # lane-dense weight tile
                pl.BlockSpec((1, tn), lambda i, j: (0, j)),    # bias tile
            ],
            out_specs=pl.BlockSpec((tm, tn), lambda i, j: (i, j)),
        ),
        compiler_params=pltpu.CompilerParams(
            dimension_semantics=("parallel", "parallel"),
            vmem_limit_bytes=budget,
        ),
    )(x, w_kn, b_1n)

    if keep_padded or n_valid is None or n_valid == N_pad:
        return out
    return out[:, :n_valid]


def _reference(x, weight, bias):
    return jnp.tanh(x @ weight.T + bias)


if __name__ == "__main__":
    # Small shapes implied by nn.Linear(size_input, size_output).
    batch, size_input, size_output = 8, 32, 64

    key = jax.random.PRNGKey(0)
    kx, kw, kb = jax.random.split(key, 3)

    x = jax.random.normal(kx, (batch, size_input), dtype=jnp.float32)
    # Deterministic parameter init (stand-in for init_weights / init_bias):
    # Glorot-style scaling for weights, uniform for bias.
    limit = (6.0 / (size_input + size_output)) ** 0.5
    weight = jax.random.uniform(
        kw, (size_output, size_input), minval=-limit, maxval=limit,
        dtype=jnp.float32,
    )
    bias = jax.random.uniform(
        kb, (size_output,), minval=-0.1, maxval=0.1, dtype=jnp.float32
    )

    # One-time parameter prep (would live alongside module construction).
    w_kn, b_1n = prepare_linear_hidden_params(weight, bias)

    out = linear_hidden_forward(x, w_kn, b_1n, n_valid=size_output)
    out = jax.block_until_ready(out)

    ref = _reference(x, weight, bias)
    assert out.shape == (batch, size_output)
    assert jnp.allclose(out, ref, atol=1e-5, rtol=1e-5), "mismatch vs reference"

    print("KERNEL_OK")
</pallas_src>

<mosaic_0001>
module attributes {stable_mosaic.version = 11 : i64} {
  func.func @_linear_tanh_kernel(%arg0: i32, %arg1: i32, %arg2: memref<8x32xf32, #tpu.memory_space<vmem>>, %arg3: memref<32x128xf32, #tpu.memory_space<vmem>>, %arg4: memref<1x128xf32, #tpu.memory_space<vmem>>, %arg5: memref<8x128xf32, #tpu.memory_space<vmem>>) attributes {dimension_semantics = [#tpu.dimension_semantics<parallel>, #tpu.dimension_semantics<parallel>], iteration_bounds = array<i64: 1, 1>, scalar_prefetch = 0 : i64, scratch_operands = 0 : i64, tpu.core_type = #tpu.core_type<tc>, window_params = [{transform_indices = @transform_0, window_bounds = array<i64: 8, 32>}, {transform_indices = @transform_1, window_bounds = array<i64: 32, 128>}, {transform_indices = @transform_2, window_bounds = array<i64: 1, 128>}, {transform_indices = @transform_3, window_bounds = array<i64: 8, 128>}]} {
    %c0 = arith.constant 0 : index
    %c0_0 = arith.constant 0 : index
    %0 = vector.load %arg2[%c0, %c0_0] : memref<8x32xf32, #tpu.memory_space<vmem>>, vector<8x32xf32>
    %c0_1 = arith.constant 0 : index
    %c0_2 = arith.constant 0 : index
    %1 = vector.load %arg3[%c0_1, %c0_2] : memref<32x128xf32, #tpu.memory_space<vmem>>, vector<32x128xf32>
    %cst = arith.constant dense<0.000000e+00> : vector<8x128xf32>
    %2 = tpu.matmul %0, %1, %cst {dimension_numbers = #tpu.dot_dimension_numbers<[1], [0], [0], [1], [0, 0, 1, 1], [], []>} : vector<8x32xf32>, vector<32x128xf32>, vector<8x128xf32> -> vector<8x128xf32>
    %c0_3 = arith.constant 0 : index
    %c0_4 = arith.constant 0 : index
    %3 = vector.load %arg4[%c0_3, %c0_4] : memref<1x128xf32, #tpu.memory_space<vmem>>, vector<1x128xf32>
    %4 = vector.broadcast %3 : vector<1x128xf32> to vector<8x128xf32>
    %5 = arith.addf %2, %4 : vector<8x128xf32>
    %6 = math.tanh %5 : vector<8x128xf32>
    %c0_5 = arith.constant 0 : index
    %c0_6 = arith.constant 0 : index
    %7 = vector.load %arg5[%c0_5, %c0_6] : memref<8x128xf32, #tpu.memory_space<vmem>>, vector<8x128xf32>
    tpu.vector_store %arg5[%c0_5, %c0_6], %6 {strides = array<i32>} : memref<8x128xf32, #tpu.memory_space<vmem>>, vector<8x128xf32>,
    return
  }
  func.func @transform_0(%arg0: i32, %arg1: i32) -> (i32, i32) {
    %c0_i32 = arith.constant 0 : i32
    %c0_i32_0 = arith.constant 0 : i32
    return %arg0, %c0_i32 : i32, i32
  }
  func.func @transform_1(%arg0: i32, %arg1: i32) -> (i32, i32) {
    %c0_i32 = arith.constant 0 : i32
    %c0_i32_0 = arith.constant 0 : i32
    return %c0_i32, %arg1 : i32, i32
  }
  func.func @transform_2(%arg0: i32, %arg1: i32) -> (i32, i32) {
    %c0_i32 = arith.constant 0 : i32
    %c0_i32_0 = arith.constant 0 : i32
    return %c0_i32, %arg1 : i32, i32
  }
  func.func @transform_3(%arg0: i32, %arg1: i32) -> (i32, i32) {
    %c0_i32 = arith.constant 0 : i32
    return %arg0, %arg1 : i32, i32
  }
}

</mosaic_0001>

<bundles_post_ra>
// kernel: linear_hidden_forward.1
= control target key start
LH: loop header
LB: loop body
LE: loop exit
PB: predicated region body
PF: predicated region fallthrough
CT: control target
= control target key end

     0   :  { %8 = vsyncpa [#allocation3], 0  ;;  %s325_s0 = inlined_call_operand.hbm [shape: f32[8,32], index: 0, kind: input, shape index: {}]   ;;  %s326_s1 = inlined_call_operand.hbm [shape: f32[32,128], index: 1, kind: input, shape index: {}]   ;;  %s327_s2 = inlined_call_operand.vmem [shape: f32[1,128], index: 2, kind: input, shape index: {}]   ;;  %s328_s3 = inlined_call_operand.hbm [shape: f32[8,128], index: 3, kind: output, shape index: {}]  }
   0x1   :  { %9 = vsyncpa [#allocation6], 0 }
   0x2   :  { %10 = vsyncpa [#allocation4], 0  ;;  %s251_s12 = smov [#allocation2]   ;;  %s252_s14 = smov [#allocation5]  }
   0x3   :  { %s17_s13 = sshll.u32 %s251_s12, 4  ;;  %s26_s15 = sshll.u32 %s252_s14, 4  ;;  %s18_s13 = int_to_ptr.vmem [resolvable:$true] %s17_s13  ;;  %s279_s15 = int_to_ptr.vmem [resolvable:$true] %s26_s15 }
   0x4   :  { %s179_s18 = scalar_lea.hbm %s325_s0, 128 }
   0x5   :  { %p180_p0 = scmp.ne.s32.totalorder %s325_s0, %s179_s18  ;;  %p183_p1 = scmp.lt.u32.totalorder %s179_s18, %s325_s0 }
   0x7   :  { %p185_p2 = pnand %p183_p1, %p180_p0 }
   0x9   :  { %188 = shalt.err (!%p185_p2)
}
   0xa   :  { %s189_s23 = scalar_lea.vmem %s18_s13, 128  ;;  %p194_p4 = scmp.lt.s32.totalorder %s18_s13, %s18_s13 }
   0xb   :  { %p190_p3 = scmp.ne.s32.totalorder %s18_s13, %s189_s23  ;;  %p195_p5 = scmp.lt.s32.totalorder %s189_s23, %s189_s23 }
   0xd   :  { %p196_p6 = por %p195_p5, %p194_p4 }
   0xf   :  { %p197_p7 = pnand %p196_p6, %p190_p3 }
  0x11   :  { %200 = shalt.err (!%p197_p7)
}
  0x12   :  { %20 = dma.hbm_to_vmem [thread:$0]  %s325_s0, 128, %s18_s13, [#allocation3]  }
  0x13   :  { %s201_s28 = scalar_lea.hbm %s326_s1, 512 }
  0x14   :  { %p202_p8 = scmp.ne.s32.totalorder %s326_s1, %s201_s28  ;;  %p205_p9 = scmp.lt.u32.totalorder %s201_s28, %s326_s1 }
  0x16   :  { %p207_p10 = pnand %p205_p9, %p202_p8 }
  0x18   :  { %210 = shalt.err (!%p207_p10)
}
  0x19   :  { %s211_s6 = scalar_lea.vmem %s279_s15, 512  ;;  %p216_p12 = scmp.lt.s32.totalorder %s279_s15, %s279_s15 }
  0x1a   :  { %p212_p11 = scmp.ne.s32.totalorder %s279_s15, %s211_s6  ;;  %p217_p13 = scmp.lt.s32.totalorder %s211_s6, %s211_s6 }
  0x1c   :  { %p218_p0 = por %p217_p13, %p216_p12 }
  0x1e   :  { %p219_p1 = pnand %p218_p0, %p212_p11 }
  0x20   :  { %222 = shalt.err (!%p219_p1)
}
  0x21   :  { %s253_s0 = smov 128   ;;  %s254_s7 = smov 8  }
  0x22   :  { %32 = dma.hbm_to_vmem [thread:$0]  %s326_s1, 512, %s279_s15, [#allocation6], %s253_s0, %s253_s0, %s254_s7  }
  0x23   :  { %245 = dma.done.wait [#allocation3], 128  }
  0x24   :  { %246 = vsyncadd [#allocation3], 4294967168 }
  0x25   :  { %247 = dma.done.wait [#allocation6], 512  }
  0x26   :  { %248 = vsyncadd [#allocation6], 4294966784  ;;  %v255_v0 = vmov 0.0|0.0   ;;  %vm256_vm0 = vmmov 0   ;;  %v257_v1 = vmov 0.0   ;;  %v42_v2 = vld [vmem:[#allocation5] sm:$0xff] }
  0x27   :  { %163 = vmatprep.subr.bf16.mxu0 %v255_v0  ;;  %160 = vmatprep.mubr.msk.f32.mxu0 %vm256_vm0, %v257_v1  ;;  %v43_v3 = vld [vmem:[#allocation5 + $0x8] sm:$0xff]  ;;  %v44_v4 = vld [vmem:[#allocation5 + $0x10] sm:$0xff]  ;;  %v45_v6 = vld [vmem:[#allocation5 + $0x18] sm:$0xff]  ;;  %vm53_vm1 = vcmask 261120   ;;  %s258_s11 = smov [#allocation7]  }
  0x28   :  { %v164_v5 = vpack.c.bf16 %v43_v3, %v42_v2  ;;  %v167_v7 = vpack.c.bf16 %v45_v6, %v44_v4  ;;  %v41_v8 = vld [vmem:[#allocation2] sm:$0xff]  ;;  %s135_s12 = sshll.u32 %s258_s11, 4  ;;  %s136_s12 = int_to_ptr.vmem [resolvable:$true] %s135_s12 }
  0x29   :  { %v145_v9 = vld [vmem:[%s327_s2] ss:$0 sm:$0xff]  ;;  %s223_s13 = scalar_lea.vmem %s136_s12, 128  ;;  %p228_p3 = scmp.lt.s32.totalorder %s136_s12, %s136_s12 }
  0x2a   :  { %165 = vmatpush3.bf16.msra.mxu0 %v164_v5  ;;  %p224_p2 = scmp.ne.s32.totalorder %s136_s12, %s223_s13  ;;  %p229_p4 = scmp.lt.s32.totalorder %s223_s13, %s223_s13 }
  0x2b   :  { %166 = vmatprep.subr.bf16.mxu0 %v255_v0 }
  0x2c   :  { %p230_p5 = por %p229_p4, %p228_p3 }
  0x2e   :  { %168 = vmatpush3.bf16.msra.mxu0 %v167_v7  ;;  %p231_p6 = pnand %p230_p5, %p224_p2 }
  0x31   :  { %161 = vmatmul.mubr.msk.f32.vlgmr.msra.gmra.mrb[0].mxu0 %vm53_vm1, %v41_v8 }
 0x104   :  { %v123_v10 = vpop.f32.mrb[0].mxu0 }
 0x105   :  { %v124_v11 = vadd.f32 %v145_v9, %v123_v10  ;;  %v162_v12 = vpop.f32.mrb[1].mxu0 }
 0x107   :  { %177 = vtanh.f32 %v124_v11 }
 0x111   :  { %v178_v13 = vpop.eup %177 }
 0x112   :  { %128 = vst [vmem:[#allocation7] sm:$0xff] %v178_v13 }
 0x113   :  { %234 = shalt.err (!%p231_p6)
}
 0x114   :  { %s235_s2 = scalar_lea.hbm %s328_s3, 128 }
 0x115   :  { %p236_p7 = scmp.ne.s32.totalorder %s328_s3, %s235_s2  ;;  %p239_p8 = scmp.lt.u32.totalorder %s235_s2, %s328_s3 }
 0x117   :  { %p241_p9 = pnand %p239_p8, %p236_p7 }
 0x119   :  { %244 = shalt.err (!%p241_p9)
}
 0x11a   :  { %138 = dma.vmem_to_hbm [thread:$0]  %s136_s12, 128, %s328_s3, [#allocation4]  }
 0x11b   :  { %249 = dma.done.wait [#allocation4], 128  }
 0x11c   :  { %250 = vsyncadd [#allocation4], 4294967168 }
 0x11d   :  { %142 = vsyncpa [#allocation3], 1 }
 0x11e   :  { %143 = vsyncpa [#allocation6], 1 }
 0x11f   :  { %144 = vsyncpa [#allocation4], 1 }

</bundles_post_ra>
